<compile_context>
chip_gen: v6e
topology: v6e:2x2x1
jax: 0.10.0
libtpu: 0.0.40
codegen_flags: <defaults>
</compile_context>

<pallas_src>
import jax
import jax.numpy as jnp
from jax import lax
from jax.experimental import pallas as pl
from jax.experimental.pallas import tpu as pltpu  # noqa: F401  (TPU backend)
import numpy as np


def generator_kernel(tok_ref, wfused_ref, whh_ref, b_ref, wout_ref, bout_ref,
                     out_ref):
    """Single-invocation LSTM forward: full sequence, batched projections."""
    B, T, V = out_ref.shape
    H = whh_ref.shape[0]
    TB = tok_ref.shape[0]            # == T * B, time-major row order

    # ---- fused embedding + input projection (one MXU pass, all steps) ------
    tok = tok_ref[...]                                           # (T*B, 1) i32
    lane_ids = lax.broadcasted_iota(jnp.int32, (TB, V), 1)
    onehot = (lane_ids == tok).astype(jnp.float32)               # (T*B, V)
    x_proj = (jnp.dot(onehot, wfused_ref[...],
                      preferred_element_type=jnp.float32)
              + b_ref[...])                                      # (T*B, 4H)

    # ---- serial recurrence (T small & static -> fully unrolled) ------------
    h = jnp.zeros((B, H), jnp.float32)
    c = jnp.zeros((B, H), jnp.float32)
    h_list = []

    for t in range(T):
        gates = (x_proj[t * B:(t + 1) * B, :]
                 + jnp.dot(h, whh_ref[...],
                           preferred_element_type=jnp.float32))  # (B, 4H)

        # Per-gate activations (PyTorch order i, f, g, o): sigmoid only on
        # lanes [0:2H) and [3H:4H), tanh only on [2H:3H).
        sig_if = jax.nn.sigmoid(gates[:, :2 * H])
        i_g = sig_if[:, :H]
        f_g = sig_if[:, H:]
        g_g = jnp.tanh(gates[:, 2 * H:3 * H])
        o_g = jax.nn.sigmoid(gates[:, 3 * H:])

        c = f_g * c + i_g * g_g
        h = o_g * jnp.tanh(c)
        h_list.append(h)              # stays in vregs; no VMEM roundtrip

    # ---- batched output projection + log-softmax (outside the loop) --------
    # Permute the small (T, B, H) hidden slab (8 KiB) to batch-major once, so
    # the 128-lane log-prob output is written with a free reshape.
    hs = jnp.stack(h_list, axis=0)                               # (T, B, H)
    hs_bm = jnp.transpose(hs, (1, 0, 2)).reshape(B * T, H)       # (B*T, H)

    logits = (jnp.dot(hs_bm, wout_ref[...],
                      preferred_element_type=jnp.float32)
              + bout_ref[...])                                   # (B*T, V)
    m = jnp.max(logits, axis=-1, keepdims=True)
    shifted = logits - m
    lse = jnp.log(jnp.sum(jnp.exp(shifted), axis=-1, keepdims=True))
    out_ref[...] = (shifted - lse).reshape(B, T, V)              # free reshape


def generator_forward(tokens, embed_w, w_ih, w_hh, b_gates, w_out, b_out):
    """tokens: (B, T) int32.  Returns log-probs (B, T, V) float32."""
    B, T = tokens.shape
    V = w_out.shape[1]

    # Fold the (frozen) Embedding into the LSTM input projection (exact):
    #   one_hot(x) @ embed_w @ W_ih == one_hot(x) @ (embed_w @ W_ih)
    w_fused = jnp.dot(embed_w.astype(jnp.float32),
                      w_ih.astype(jnp.float32))                  # (V, 4H)

    # Time-major token order so each recurrence step reads a contiguous
    # row-block of the fused input projection.
    tokens_tm = tokens.T.reshape(T * B, 1).astype(jnp.int32)     # (T*B, 1)

    # Single-invocation kernel: no grid, no pipelining; whole arrays in VMEM.
    return pl.pallas_call(
        generator_kernel,
        out_shape=jax.ShapeDtypeStruct((B, T, V), jnp.float32),
    )(tokens_tm, w_fused, w_hh, b_gates, w_out, b_out)


def generator_reference(tokens, embed_w, w_ih, w_hh, b_gates, w_out, b_out):
    """Pure-JAX reference of the same forward pass (for a sanity check)."""
    H = w_hh.shape[0]
    emb = jnp.take(embed_w, tokens, axis=0)              # (B, T, E)
    B = emb.shape[0]

    def step(carry, x_t):
        h, c = carry
        gates = x_t @ w_ih + h @ w_hh + b_gates[0]
        i_g = jax.nn.sigmoid(gates[:, 0 * H:1 * H])
        f_g = jax.nn.sigmoid(gates[:, 1 * H:2 * H])
        g_g = jnp.tanh(gates[:, 2 * H:3 * H])
        o_g = jax.nn.sigmoid(gates[:, 3 * H:4 * H])
        c_new = f_g * c + i_g * g_g
        h_new = o_g * jnp.tanh(c_new)
        return (h_new, c_new), h_new

    h0 = jnp.zeros((B, H), jnp.float32)
    c0 = jnp.zeros((B, H), jnp.float32)
    _, hs = lax.scan(step, (h0, c0), jnp.transpose(emb, (1, 0, 2)))  # (T, B, H)
    logits = hs @ w_out + b_out[0]                       # (T, B, V)
    logp = jax.nn.log_softmax(logits, axis=-1)
    return jnp.transpose(logp, (1, 0, 2))


if __name__ == "__main__":
    # Config (small, consistent with the module): dict_size=V, embed_dim=E,
    # hidden_size=H; batch_first=True.
    B, T = 8, 8
    E, H, V = 32, 32, 128

    key = jax.random.PRNGKey(0)
    k_emb, k_wih, k_whh, k_bih, k_bhh, k_wout, k_bout, k_tok = jax.random.split(key, 8)

    # Deterministic "normal"-style init (init_param), scaled down for stability.
    embed_w = 0.1 * jax.random.normal(k_emb, (V, E), jnp.float32)
    # PyTorch LSTM weights are (4H, E)/(4H, H); stored transposed for x @ W.
    w_ih = 0.1 * jax.random.normal(k_wih, (E, 4 * H), jnp.float32)
    w_hh = 0.1 * jax.random.normal(k_whh, (H, 4 * H), jnp.float32)
    b_gates = (0.1 * jax.random.normal(k_bih, (1, 4 * H), jnp.float32)
               + 0.1 * jax.random.normal(k_bhh, (1, 4 * H), jnp.float32))  # b_ih + b_hh
    w_out = 0.1 * jax.random.normal(k_wout, (H, V), jnp.float32)
    b_out = 0.1 * jax.random.normal(k_bout, (1, V), jnp.float32)

    tokens = jax.random.randint(k_tok, (B, T), 0, V, dtype=jnp.int32)

    out = generator_forward(tokens, embed_w, w_ih, w_hh, b_gates, w_out, b_out)
    out = jax.block_until_ready(out)

    ref = generator_reference(tokens, embed_w, w_ih, w_hh, b_gates, w_out, b_out)
    np.testing.assert_allclose(np.asarray(out), np.asarray(ref), rtol=1e-4, atol=1e-4)

    print("KERNEL_OK")
</pallas_src>

<mosaic_0001>
module attributes {stable_mosaic.version = 11 : i64} {
  func.func @generator_kernel(%arg0: memref<64x1xi32, #tpu.memory_space<vmem>>, %arg1: memref<128x128xf32, #tpu.memory_space<vmem>>, %arg2: memref<32x128xf32, #tpu.memory_space<vmem>>, %arg3: memref<1x128xf32, #tpu.memory_space<vmem>>, %arg4: memref<32x128xf32, #tpu.memory_space<vmem>>, %arg5: memref<1x128xf32, #tpu.memory_space<vmem>>, %arg6: memref<8x8x128xf32, #tpu.memory_space<vmem>>) attributes {dimension_semantics = [], scalar_prefetch = 0 : i64, scratch_operands = 0 : i64, tpu.core_type = #tpu.core_type<tc>} {
    %c0 = arith.constant 0 : index
    %c0_0 = arith.constant 0 : index
    %0 = vector.load %arg0[%c0, %c0_0] : memref<64x1xi32, #tpu.memory_space<vmem>>, vector<64x1xi32>
    %1 = tpu.iota {dimensions = array<i32: 1>} : vector<64x128xi32>
    %2 = vector.broadcast %0 : vector<64x1xi32> to vector<64x128xi32>
    %3 = arith.cmpi eq, %1, %2 : vector<64x128xi32>
    %4 = arith.extui %3 : vector<64x128xi1> to vector<64x128xi32>
    %5 = arith.sitofp %4 : vector<64x128xi32> to vector<64x128xf32>
    %c0_1 = arith.constant 0 : index
    %c0_2 = arith.constant 0 : index
    %6 = vector.load %arg1[%c0_1, %c0_2] : memref<128x128xf32, #tpu.memory_space<vmem>>, vector<128x128xf32>
    %cst = arith.constant dense<0.000000e+00> : vector<64x128xf32>
    %7 = tpu.matmul %5, %6, %cst {dimension_numbers = #tpu.dot_dimension_numbers<[1], [0], [0], [1], [0, 0, 1, 1], [], []>} : vector<64x128xf32>, vector<128x128xf32>, vector<64x128xf32> -> vector<64x128xf32>
    %c0_3 = arith.constant 0 : index
    %c0_4 = arith.constant 0 : index
    %8 = vector.load %arg3[%c0_3, %c0_4] : memref<1x128xf32, #tpu.memory_space<vmem>>, vector<1x128xf32>
    %9 = vector.broadcast %8 : vector<1x128xf32> to vector<64x128xf32>
    %10 = arith.addf %7, %9 : vector<64x128xf32>
    %cst_5 = arith.constant 0.000000e+00 : f32
    %11 = vector.broadcast %cst_5 : f32 to vector<8x32xf32>
    %cst_6 = arith.constant 0.000000e+00 : f32
    %12 = vector.broadcast %cst_6 : f32 to vector<8x32xf32>
    %13 = vector.extract_strided_slice %10 {offsets = [0, 0], sizes = [8, 128], strides = [1, 1]} : vector<64x128xf32> to vector<8x128xf32>
    %c0_7 = arith.constant 0 : index
    %c0_8 = arith.constant 0 : index
    %14 = vector.load %arg2[%c0_7, %c0_8] : memref<32x128xf32, #tpu.memory_space<vmem>>, vector<32x128xf32>
    %cst_9 = arith.constant dense<0.000000e+00> : vector<8x128xf32>
    %15 = tpu.matmul %11, %14, %cst_9 {dimension_numbers = #tpu.dot_dimension_numbers<[1], [0], [0], [1], [0, 0, 1, 1], [], []>} : vector<8x32xf32>, vector<32x128xf32>, vector<8x128xf32> -> vector<8x128xf32>
    %16 = arith.addf %13, %15 : vector<8x128xf32>
    %17 = vector.extract_strided_slice %16 {offsets = [0, 0], sizes = [8, 64], strides = [1, 1]} : vector<8x128xf32> to vector<8x64xf32>
    %18 = arith.negf %17 : vector<8x64xf32>
    %19 = math.exp %18 : vector<8x64xf32>
    %cst_10 = arith.constant 1.000000e+00 : f32
    %20 = vector.broadcast %cst_10 : f32 to vector<8x64xf32>
    %21 = arith.addf %20, %19 : vector<8x64xf32>
    %22 = arith.divf %20, %21 : vector<8x64xf32>
    %23 = vector.extract_strided_slice %22 {offsets = [0, 0], sizes = [8, 32], strides = [1, 1]} : vector<8x64xf32> to vector<8x32xf32>
    %24 = vector.extract_strided_slice %22 {offsets = [0, 32], sizes = [8, 32], strides = [1, 1]} : vector<8x64xf32> to vector<8x32xf32>
    %25 = vector.extract_strided_slice %16 {offsets = [0, 64], sizes = [8, 32], strides = [1, 1]} : vector<8x128xf32> to vector<8x32xf32>
    %26 = math.tanh %25 : vector<8x32xf32>
    %27 = vector.extract_strided_slice %16 {offsets = [0, 96], sizes = [8, 32], strides = [1, 1]} : vector<8x128xf32> to vector<8x32xf32>
    %28 = arith.negf %27 : vector<8x32xf32>
    %29 = math.exp %28 : vector<8x32xf32>
    %cst_11 = arith.constant 1.000000e+00 : f32
    %30 = vector.broadcast %cst_11 : f32 to vector<8x32xf32>
    %31 = arith.addf %30, %29 : vector<8x32xf32>
    %32 = arith.divf %30, %31 : vector<8x32xf32>
    %33 = arith.mulf %24, %12 : vector<8x32xf32>
    %34 = arith.mulf %23, %26 : vector<8x32xf32>
    %35 = arith.addf %33, %34 : vector<8x32xf32>
    %36 = math.tanh %35 : vector<8x32xf32>
    %37 = arith.mulf %32, %36 : vector<8x32xf32>
    %38 = vector.extract_strided_slice %10 {offsets = [8, 0], sizes = [8, 128], strides = [1, 1]} : vector<64x128xf32> to vector<8x128xf32>
    %c0_12 = arith.constant 0 : index
    %c0_13 = arith.constant 0 : index
    %39 = vector.load %arg2[%c0_12, %c0_13] : memref<32x128xf32, #tpu.memory_space<vmem>>, vector<32x128xf32>
    %cst_14 = arith.constant dense<0.000000e+00> : vector<8x128xf32>
    %40 = tpu.matmul %37, %39, %cst_14 {dimension_numbers = #tpu.dot_dimension_numbers<[1], [0], [0], [1], [0, 0, 1, 1], [], []>} : vector<8x32xf32>, vector<32x128xf32>, vector<8x128xf32> -> vector<8x128xf32>
    %41 = arith.addf %38, %40 : vector<8x128xf32>
    %42 = vector.extract_strided_slice %41 {offsets = [0, 0], sizes = [8, 64], strides = [1, 1]} : vector<8x128xf32> to vector<8x64xf32>
    %43 = arith.negf %42 : vector<8x64xf32>
    %44 = math.exp %43 : vector<8x64xf32>
    %cst_15 = arith.constant 1.000000e+00 : f32
    %45 = vector.broadcast %cst_15 : f32 to vector<8x64xf32>
    %46 = arith.addf %45, %44 : vector<8x64xf32>
    %47 = arith.divf %45, %46 : vector<8x64xf32>
    %48 = vector.extract_strided_slice %47 {offsets = [0, 0], sizes = [8, 32], strides = [1, 1]} : vector<8x64xf32> to vector<8x32xf32>
    %49 = vector.extract_strided_slice %47 {offsets = [0, 32], sizes = [8, 32], strides = [1, 1]} : vector<8x64xf32> to vector<8x32xf32>
    %50 = vector.extract_strided_slice %41 {offsets = [0, 64], sizes = [8, 32], strides = [1, 1]} : vector<8x128xf32> to vector<8x32xf32>
    %51 = math.tanh %50 : vector<8x32xf32>
    %52 = vector.extract_strided_slice %41 {offsets = [0, 96], sizes = [8, 32], strides = [1, 1]} : vector<8x128xf32> to vector<8x32xf32>
    %53 = arith.negf %52 : vector<8x32xf32>
    %54 = math.exp %53 : vector<8x32xf32>
    %cst_16 = arith.constant 1.000000e+00 : f32
    %55 = vector.broadcast %cst_16 : f32 to vector<8x32xf32>
    %56 = arith.addf %55, %54 : vector<8x32xf32>
    %57 = arith.divf %55, %56 : vector<8x32xf32>
    %58 = arith.mulf %49, %35 : vector<8x32xf32>
    %59 = arith.mulf %48, %51 : vector<8x32xf32>
    %60 = arith.addf %58, %59 : vector<8x32xf32>
    %61 = math.tanh %60 : vector<8x32xf32>
    %62 = arith.mulf %57, %61 : vector<8x32xf32>
    %63 = vector.extract_strided_slice %10 {offsets = [16, 0], sizes = [8, 128], strides = [1, 1]} : vector<64x128xf32> to vector<8x128xf32>
    %c0_17 = arith.constant 0 : index
    %c0_18 = arith.constant 0 : index
    %64 = vector.load %arg2[%c0_17, %c0_18] : memref<32x128xf32, #tpu.memory_space<vmem>>, vector<32x128xf32>
    %cst_19 = arith.constant dense<0.000000e+00> : vector<8x128xf32>
    %65 = tpu.matmul %62, %64, %cst_19 {dimension_numbers = #tpu.dot_dimension_numbers<[1], [0], [0], [1], [0, 0, 1, 1], [], []>} : vector<8x32xf32>, vector<32x128xf32>, vector<8x128xf32> -> vector<8x128xf32>
    %66 = arith.addf %63, %65 : vector<8x128xf32>
    %67 = vector.extract_strided_slice %66 {offsets = [0, 0], sizes = [8, 64], strides = [1, 1]} : vector<8x128xf32> to vector<8x64xf32>
    %68 = arith.negf %67 : vector<8x64xf32>
    %69 = math.exp %68 : vector<8x64xf32>
    %cst_20 = arith.constant 1.000000e+00 : f32
    %70 = vector.broadcast %cst_20 : f32 to vector<8x64xf32>
    %71 = arith.addf %70, %69 : vector<8x64xf32>
    %72 = arith.divf %70, %71 : vector<8x64xf32>
    %73 = vector.extract_strided_slice %72 {offsets = [0, 0], sizes = [8, 32], strides = [1, 1]} : vector<8x64xf32> to vector<8x32xf32>
    %74 = vector.extract_strided_slice %72 {offsets = [0, 32], sizes = [8, 32], strides = [1, 1]} : vector<8x64xf32> to vector<8x32xf32>
    %75 = vector.extract_strided_slice %66 {offsets = [0, 64], sizes = [8, 32], strides = [1, 1]} : vector<8x128xf32> to vector<8x32xf32>
    %76 = math.tanh %75 : vector<8x32xf32>
    %77 = vector.extract_strided_slice %66 {offsets = [0, 96], sizes = [8, 32], strides = [1, 1]} : vector<8x128xf32> to vector<8x32xf32>
    %78 = arith.negf %77 : vector<8x32xf32>
    %79 = math.exp %78 : vector<8x32xf32>
    %cst_21 = arith.constant 1.000000e+00 : f32
    %80 = vector.broadcast %cst_21 : f32 to vector<8x32xf32>
    %81 = arith.addf %80, %79 : vector<8x32xf32>
    %82 = arith.divf %80, %81 : vector<8x32xf32>
    %83 = arith.mulf %74, %60 : vector<8x32xf32>
    %84 = arith.mulf %73, %76 : vector<8x32xf32>
    %85 = arith.addf %83, %84 : vector<8x32xf32>
    %86 = math.tanh %85 : vector<8x32xf32>
    %87 = arith.mulf %82, %86 : vector<8x32xf32>
    %88 = vector.extract_strided_slice %10 {offsets = [24, 0], sizes = [8, 128], strides = [1, 1]} : vector<64x128xf32> to vector<8x128xf32>
    %c0_22 = arith.constant 0 : index
    %c0_23 = arith.constant 0 : index
    %89 = vector.load %arg2[%c0_22, %c0_23] : memref<32x128xf32, #tpu.memory_space<vmem>>, vector<32x128xf32>
    %cst_24 = arith.constant dense<0.000000e+00> : vector<8x128xf32>
    %90 = tpu.matmul %87, %89, %cst_24 {dimension_numbers = #tpu.dot_dimension_numbers<[1], [0], [0], [1], [0, 0, 1, 1], [], []>} : vector<8x32xf32>, vector<32x128xf32>, vector<8x128xf32> -> vector<8x128xf32>
    %91 = arith.addf %88, %90 : vector<8x128xf32>
    %92 = vector.extract_strided_slice %91 {offsets = [0, 0], sizes = [8, 64], strides = [1, 1]} : vector<8x128xf32> to vector<8x64xf32>
    %93 = arith.negf %92 : vector<8x64xf32>
    %94 = math.exp %93 : vector<8x64xf32>
    %cst_25 = arith.constant 1.000000e+00 : f32
    %95 = vector.broadcast %cst_25 : f32 to vector<8x64xf32>
    %96 = arith.addf %95, %94 : vector<8x64xf32>
    %97 = arith.divf %95, %96 : vector<8x64xf32>
    %98 = vector.extract_strided_slice %97 {offsets = [0, 0], sizes = [8, 32], strides = [1, 1]} : vector<8x64xf32> to vector<8x32xf32>
    %99 = vector.extract_strided_slice %97 {offsets = [0, 32], sizes = [8, 32], strides = [1, 1]} : vector<8x64xf32> to vector<8x32xf32>
    %100 = vector.extract_strided_slice %91 {offsets = [0, 64], sizes = [8, 32], strides = [1, 1]} : vector<8x128xf32> to vector<8x32xf32>
    %101 = math.tanh %100 : vector<8x32xf32>
    %102 = vector.extract_strided_slice %91 {offsets = [0, 96], sizes = [8, 32], strides = [1, 1]} : vector<8x128xf32> to vector<8x32xf32>
    %103 = arith.negf %102 : vector<8x32xf32>
    %104 = math.exp %103 : vector<8x32xf32>
    %cst_26 = arith.constant 1.000000e+00 : f32
    %105 = vector.broadcast %cst_26 : f32 to vector<8x32xf32>
    %106 = arith.addf %105, %104 : vector<8x32xf32>
    %107 = arith.divf %105, %106 : vector<8x32xf32>
    %108 = arith.mulf %99, %85 : vector<8x32xf32>
    %109 = arith.mulf %98, %101 : vector<8x32xf32>
    %110 = arith.addf %108, %109 : vector<8x32xf32>
    %111 = math.tanh %110 : vector<8x32xf32>
    %112 = arith.mulf %107, %111 : vector<8x32xf32>
    %113 = vector.extract_strided_slice %10 {offsets = [32, 0], sizes = [8, 128], strides = [1, 1]} : vector<64x128xf32> to vector<8x128xf32>
    %c0_27 = arith.constant 0 : index
    %c0_28 = arith.constant 0 : index
    %114 = vector.load %arg2[%c0_27, %c0_28] : memref<32x128xf32, #tpu.memory_space<vmem>>, vector<32x128xf32>
    %cst_29 = arith.constant dense<0.000000e+00> : vector<8x128xf32>
    %115 = tpu.matmul %112, %114, %cst_29 {dimension_numbers = #tpu.dot_dimension_numbers<[1], [0], [0], [1], [0, 0, 1, 1], [], []>} : vector<8x32xf32>, vector<32x128xf32>, vector<8x128xf32> -> vector<8x128xf32>
    %116 = arith.addf %113, %115 : vector<8x128xf32>
    %117 = vector.extract_strided_slice %116 {offsets = [0, 0], sizes = [8, 64], strides = [1, 1]} : vector<8x128xf32> to vector<8x64xf32>
    %118 = arith.negf %117 : vector<8x64xf32>
    %119 = math.exp %118 : vector<8x64xf32>
    %cst_30 = arith.constant 1.000000e+00 : f32
    %120 = vector.broadcast %cst_30 : f32 to vector<8x64xf32>
    %121 = arith.addf %120, %119 : vector<8x64xf32>
    %122 = arith.divf %120, %121 : vector<8x64xf32>
    %123 = vector.extract_strided_slice %122 {offsets = [0, 0], sizes = [8, 32], strides = [1, 1]} : vector<8x64xf32> to vector<8x32xf32>
    %124 = vector.extract_strided_slice %122 {offsets = [0, 32], sizes = [8, 32], strides = [1, 1]} : vector<8x64xf32> to vector<8x32xf32>
    %125 = vector.extract_strided_slice %116 {offsets = [0, 64], sizes = [8, 32], strides = [1, 1]} : vector<8x128xf32> to vector<8x32xf32>
    %126 = math.tanh %125 : vector<8x32xf32>
    %127 = vector.extract_strided_slice %116 {offsets = [0, 96], sizes = [8, 32], strides = [1, 1]} : vector<8x128xf32> to vector<8x32xf32>
    %128 = arith.negf %127 : vector<8x32xf32>
    %129 = math.exp %128 : vector<8x32xf32>
    %cst_31 = arith.constant 1.000000e+00 : f32
    %130 = vector.broadcast %cst_31 : f32 to vector<8x32xf32>
    %131 = arith.addf %130, %129 : vector<8x32xf32>
    %132 = arith.divf %130, %131 : vector<8x32xf32>
    %133 = arith.mulf %124, %110 : vector<8x32xf32>
    %134 = arith.mulf %123, %126 : vector<8x32xf32>
    %135 = arith.addf %133, %134 : vector<8x32xf32>
    %136 = math.tanh %135 : vector<8x32xf32>
    %137 = arith.mulf %132, %136 : vector<8x32xf32>
    %138 = vector.extract_strided_slice %10 {offsets = [40, 0], sizes = [8, 128], strides = [1, 1]} : vector<64x128xf32> to vector<8x128xf32>
    %c0_32 = arith.constant 0 : index
    %c0_33 = arith.constant 0 : index
    %139 = vector.load %arg2[%c0_32, %c0_33] : memref<32x128xf32, #tpu.memory_space<vmem>>, vector<32x128xf32>
    %cst_34 = arith.constant dense<0.000000e+00> : vector<8x128xf32>
    %140 = tpu.matmul %137, %139, %cst_34 {dimension_numbers = #tpu.dot_dimension_numbers<[1], [0], [0], [1], [0, 0, 1, 1], [], []>} : vector<8x32xf32>, vector<32x128xf32>, vector<8x128xf32> -> vector<8x128xf32>
    %141 = arith.addf %138, %140 : vector<8x128xf32>
    %142 = vector.extract_strided_slice %141 {offsets = [0, 0], sizes = [8, 64], strides = [1, 1]} : vector<8x128xf32> to vector<8x64xf32>
    %143 = arith.negf %142 : vector<8x64xf32>
    %144 = math.exp %143 : vector<8x64xf32>
    %cst_35 = arith.constant 1.000000e+00 : f32
    %145 = vector.broadcast %cst_35 : f32 to vector<8x64xf32>
    %146 = arith.addf %145, %144 : vector<8x64xf32>
    %147 = arith.divf %145, %146 : vector<8x64xf32>
    %148 = vector.extract_strided_slice %147 {offsets = [0, 0], sizes = [8, 32], strides = [1, 1]} : vector<8x64xf32> to vector<8x32xf32>
    %149 = vector.extract_strided_slice %147 {offsets = [0, 32], sizes = [8, 32], strides = [1, 1]} : vector<8x64xf32> to vector<8x32xf32>
    %150 = vector.extract_strided_slice %141 {offsets = [0, 64], sizes = [8, 32], strides = [1, 1]} : vector<8x128xf32> to vector<8x32xf32>
    %151 = math.tanh %150 : vector<8x32xf32>
    %152 = vector.extract_strided_slice %141 {offsets = [0, 96], sizes = [8, 32], strides = [1, 1]} : vector<8x128xf32> to vector<8x32xf32>
    %153 = arith.negf %152 : vector<8x32xf32>
    %154 = math.exp %153 : vector<8x32xf32>
    %cst_36 = arith.constant 1.000000e+00 : f32
    %155 = vector.broadcast %cst_36 : f32 to vector<8x32xf32>
    %156 = arith.addf %155, %154 : vector<8x32xf32>
    %157 = arith.divf %155, %156 : vector<8x32xf32>
    %158 = arith.mulf %149, %135 : vector<8x32xf32>
    %159 = arith.mulf %148, %151 : vector<8x32xf32>
    %160 = arith.addf %158, %159 : vector<8x32xf32>
    %161 = math.tanh %160 : vector<8x32xf32>
    %162 = arith.mulf %157, %161 : vector<8x32xf32>
    %163 = vector.extract_strided_slice %10 {offsets = [48, 0], sizes = [8, 128], strides = [1, 1]} : vector<64x128xf32> to vector<8x128xf32>
    %c0_37 = arith.constant 0 : index
    %c0_38 = arith.constant 0 : index
    %164 = vector.load %arg2[%c0_37, %c0_38] : memref<32x128xf32, #tpu.memory_space<vmem>>, vector<32x128xf32>
    %cst_39 = arith.constant dense<0.000000e+00> : vector<8x128xf32>
    %165 = tpu.matmul %162, %164, %cst_39 {dimension_numbers = #tpu.dot_dimension_numbers<[1], [0], [0], [1], [0, 0, 1, 1], [], []>} : vector<8x32xf32>, vector<32x128xf32>, vector<8x128xf32> -> vector<8x128xf32>
    %166 = arith.addf %163, %165 : vector<8x128xf32>
    %167 = vector.extract_strided_slice %166 {offsets = [0, 0], sizes = [8, 64], strides = [1, 1]} : vector<8x128xf32> to vector<8x64xf32>
    %168 = arith.negf %167 : vector<8x64xf32>
    %169 = math.exp %168 : vector<8x64xf32>
    %cst_40 = arith.constant 1.000000e+00 : f32
    %170 = vector.broadcast %cst_40 : f32 to vector<8x64xf32>
    %171 = arith.addf %170, %169 : vector<8x64xf32>
    %172 = arith.divf %170, %171 : vector<8x64xf32>
    %173 = vector.extract_strided_slice %172 {offsets = [0, 0], sizes = [8, 32], strides = [1, 1]} : vector<8x64xf32> to vector<8x32xf32>
    %174 = vector.extract_strided_slice %172 {offsets = [0, 32], sizes = [8, 32], strides = [1, 1]} : vector<8x64xf32> to vector<8x32xf32>
    %175 = vector.extract_strided_slice %166 {offsets = [0, 64], sizes = [8, 32], strides = [1, 1]} : vector<8x128xf32> to vector<8x32xf32>
    %176 = math.tanh %175 : vector<8x32xf32>
    %177 = vector.extract_strided_slice %166 {offsets = [0, 96], sizes = [8, 32], strides = [1, 1]} : vector<8x128xf32> to vector<8x32xf32>
    %178 = arith.negf %177 : vector<8x32xf32>
    %179 = math.exp %178 : vector<8x32xf32>
    %cst_41 = arith.constant 1.000000e+00 : f32
    %180 = vector.broadcast %cst_41 : f32 to vector<8x32xf32>
    %181 = arith.addf %180, %179 : vector<8x32xf32>
    %182 = arith.divf %180, %181 : vector<8x32xf32>
    %183 = arith.mulf %174, %160 : vector<8x32xf32>
    %184 = arith.mulf %173, %176 : vector<8x32xf32>
    %185 = arith.addf %183, %184 : vector<8x32xf32>
    %186 = math.tanh %185 : vector<8x32xf32>
    %187 = arith.mulf %182, %186 : vector<8x32xf32>
    %188 = vector.extract_strided_slice %10 {offsets = [56, 0], sizes = [8, 128], strides = [1, 1]} : vector<64x128xf32> to vector<8x128xf32>
    %c0_42 = arith.constant 0 : index
    %c0_43 = arith.constant 0 : index
    %189 = vector.load %arg2[%c0_42, %c0_43] : memref<32x128xf32, #tpu.memory_space<vmem>>, vector<32x128xf32>
    %cst_44 = arith.constant dense<0.000000e+00> : vector<8x128xf32>
    %190 = tpu.matmul %187, %189, %cst_44 {dimension_numbers = #tpu.dot_dimension_numbers<[1], [0], [0], [1], [0, 0, 1, 1], [], []>} : vector<8x32xf32>, vector<32x128xf32>, vector<8x128xf32> -> vector<8x128xf32>
    %191 = arith.addf %188, %190 : vector<8x128xf32>
    %192 = vector.extract_strided_slice %191 {offsets = [0, 0], sizes = [8, 64], strides = [1, 1]} : vector<8x128xf32> to vector<8x64xf32>
    %193 = arith.negf %192 : vector<8x64xf32>
    %194 = math.exp %193 : vector<8x64xf32>
    %cst_45 = arith.constant 1.000000e+00 : f32
    %195 = vector.broadcast %cst_45 : f32 to vector<8x64xf32>
    %196 = arith.addf %195, %194 : vector<8x64xf32>
    %197 = arith.divf %195, %196 : vector<8x64xf32>
    %198 = vector.extract_strided_slice %197 {offsets = [0, 0], sizes = [8, 32], strides = [1, 1]} : vector<8x64xf32> to vector<8x32xf32>
    %199 = vector.extract_strided_slice %197 {offsets = [0, 32], sizes = [8, 32], strides = [1, 1]} : vector<8x64xf32> to vector<8x32xf32>
    %200 = vector.extract_strided_slice %191 {offsets = [0, 64], sizes = [8, 32], strides = [1, 1]} : vector<8x128xf32> to vector<8x32xf32>
    %201 = math.tanh %200 : vector<8x32xf32>
    %202 = vector.extract_strided_slice %191 {offsets = [0, 96], sizes = [8, 32], strides = [1, 1]} : vector<8x128xf32> to vector<8x32xf32>
    %203 = arith.negf %202 : vector<8x32xf32>
    %204 = math.exp %203 : vector<8x32xf32>
    %cst_46 = arith.constant 1.000000e+00 : f32
    %205 = vector.broadcast %cst_46 : f32 to vector<8x32xf32>
    %206 = arith.addf %205, %204 : vector<8x32xf32>
    %207 = arith.divf %205, %206 : vector<8x32xf32>
    %208 = arith.mulf %199, %185 : vector<8x32xf32>
    %209 = arith.mulf %198, %201 : vector<8x32xf32>
    %210 = arith.addf %208, %209 : vector<8x32xf32>
    %211 = math.tanh %210 : vector<8x32xf32>
    %212 = arith.mulf %207, %211 : vector<8x32xf32>
    %213 = vector.shape_cast %37 : vector<8x32xf32> to vector<1x8x32xf32>
    %214 = vector.shape_cast %62 : vector<8x32xf32> to vector<1x8x32xf32>
    %215 = vector.shape_cast %87 : vector<8x32xf32> to vector<1x8x32xf32>
    %216 = vector.shape_cast %112 : vector<8x32xf32> to vector<1x8x32xf32>
    %217 = vector.shape_cast %137 : vector<8x32xf32> to vector<1x8x32xf32>
    %218 = vector.shape_cast %162 : vector<8x32xf32> to vector<1x8x32xf32>
    %219 = vector.shape_cast %187 : vector<8x32xf32> to vector<1x8x32xf32>
    %220 = vector.shape_cast %212 : vector<8x32xf32> to vector<1x8x32xf32>
    %221 = tpu.concatenate %213, %214, %215, %216, %217, %218, %219, %220 in 0 : vector<1x8x32xf32>, vector<1x8x32xf32>, vector<1x8x32xf32>, vector<1x8x32xf32>, vector<1x8x32xf32>, vector<1x8x32xf32>, vector<1x8x32xf32>, vector<1x8x32xf32> -> vector<8x8x32xf32>
    %222 = tpu.transpose %221, [1, 0, 2] : vector<8x8x32xf32> -> vector<8x8x32xf32>
    %223 = vector.shape_cast %222 : vector<8x8x32xf32> to vector<64x32xf32>
    %c0_47 = arith.constant 0 : index
    %c0_48 = arith.constant 0 : index
    %224 = vector.load %arg4[%c0_47, %c0_48] : memref<32x128xf32, #tpu.memory_space<vmem>>, vector<32x128xf32>
    %cst_49 = arith.constant dense<0.000000e+00> : vector<64x128xf32>
    %225 = tpu.matmul %223, %224, %cst_49 {dimension_numbers = #tpu.dot_dimension_numbers<[1], [0], [0], [1], [0, 0, 1, 1], [], []>} : vector<64x32xf32>, vector<32x128xf32>, vector<64x128xf32> -> vector<64x128xf32>
    %c0_50 = arith.constant 0 : index
    %c0_51 = arith.constant 0 : index
    %226 = vector.load %arg5[%c0_50, %c0_51] : memref<1x128xf32, #tpu.memory_space<vmem>>, vector<1x128xf32>
    %227 = vector.broadcast %226 : vector<1x128xf32> to vector<64x128xf32>
    %228 = arith.addf %225, %227 : vector<64x128xf32>
    %cst_52 = arith.constant dense<0xFF800000> : vector<64xf32>
    %229 = vector.multi_reduction <maximumf>, %228, %cst_52 [1] : vector<64x128xf32> to vector<64xf32>
    %230 = vector.shape_cast %229 : vector<64xf32> to vector<64x1xf32>
    %231 = vector.broadcast %230 : vector<64x1xf32> to vector<64x128xf32>
    %232 = arith.subf %228, %231 : vector<64x128xf32>
    %233 = math.exp %232 : vector<64x128xf32>
    %cst_53 = arith.constant dense<0.000000e+00> : vector<64xf32>
    %234 = vector.multi_reduction <add>, %233, %cst_53 [1] : vector<64x128xf32> to vector<64xf32>
    %235 = vector.shape_cast %234 : vector<64xf32> to vector<64x1xf32>
    %236 = math.log %235 : vector<64x1xf32>
    %237 = vector.broadcast %236 : vector<64x1xf32> to vector<64x128xf32>
    %238 = arith.subf %232, %237 : vector<64x128xf32>
    %239 = vector.shape_cast %238 : vector<64x128xf32> to vector<8x8x128xf32>
    %c0_54 = arith.constant 0 : index
    %c0_55 = arith.constant 0 : index
    %c0_56 = arith.constant 0 : index
    %240 = vector.load %arg6[%c0_54, %c0_55, %c0_56] : memref<8x8x128xf32, #tpu.memory_space<vmem>>, vector<8x8x128xf32>
    tpu.vector_store %arg6[%c0_54, %c0_55, %c0_56], %239 {strides = array<i32>} : memref<8x8x128xf32, #tpu.memory_space<vmem>>, vector<8x8x128xf32>,
    return
  }
}

</mosaic_0001>

<bundles_post_ra>
// kernel: tpu_custom_call.1
= control target key start
LH: loop header
LB: loop body
LE: loop exit
PB: predicated region body
PF: predicated region fallthrough
CT: control target
= control target key end

     0   :  { %11 = vsyncpa [#allocation3], 0  ;;  %s2178_s0 = inlined_call_operand.vmem [shape: s32[64,1], index: 0, kind: input, shape index: {}]   ;;  %s2179_s1 = inlined_call_operand.hbm [shape: f32[128,128], index: 1, kind: input, shape index: {}]   ;;  %s2180_s2 = inlined_call_operand.vmem [shape: f32[32,128], index: 2, kind: input, shape index: {}]   ;;  %s2181_s3 = inlined_call_operand.vmem [shape: f32[1,128], index: 3, kind: input, shape index: {}]   ;;  %s2182_s4 = inlined_call_operand.vmem [shape: f32[32,128], index: 4, kind: input, shape index: {}]   ;;  %s2183_s5 = inlined_call_operand.vmem [shape: f32[1,128], index: 5, kind: input, shape index: {}]   ;;  %s2184_s6 = inlined_call_operand.hbm [shape: f32[8,8,128], index: 6, kind: output, shape index: {}]  }
   0x1   :  { %12 = vsyncpa [#allocation4], 0  ;;  %s1842_s21 = smov [#allocation2]  }
   0x2   :  { %s20_s22 = sshll.u32 %s1842_s21, 4  ;;  %s21_s22 = int_to_ptr.vmem [resolvable:$true] %s20_s22 }
   0x3   :  { %s1806_s23 = scalar_lea.vmem %s21_s22, 2048  ;;  %p1811_p1 = scmp.lt.s32.totalorder %s21_s22, %s21_s22 }
   0x4   :  { %p1807_p0 = scmp.ne.s32.totalorder %s21_s22, %s1806_s23  ;;  %p1812_p2 = scmp.lt.s32.totalorder %s1806_s23, %s1806_s23 }
   0x6   :  { %p1813_p3 = por %p1812_p2, %p1811_p1 }
   0x8   :  { %p1814_p4 = pnand %p1813_p3, %p1807_p0 }
   0xa   :  { %1817 = shalt.err (!%p1814_p4)
}
   0xb   :  { %s1843_s24 = smov 128   ;;  %s1844_s25 = smov 8  }
   0xc   :  { %26 = dma.hbm_to_vmem [thread:$0]  %s2179_s1, 2048, %s21_s22, [#allocation3], %s1843_s24, %s1843_s24, %s1844_s25  }
   0xd   :  { %1838 = dma.done.wait [#allocation3], 2048  }
   0xe   :  { %1839 = vsyncadd [#allocation3], 4294965248  ;;  %v1845_v0 = vmov 0   ;;  %v40_v1 = vld [vmem:[%s2178_s0 + $0x10] sm:$0xff]  ;;  %v38_v2 = vld [vmem:[%s2178_s0] sm:$0xff]  ;;  %v1846_v6 = vmov 0.0   ;;  %v46_v30 = vlaneseq }
   0xf   :  { %1701 = vset.pattern.permute.xlu1 %v1845_v0  ;;  %1700 = vset.pattern.permute.xlu0 %v1845_v0  ;;  %v41_v3 = vld [vmem:[%s2178_s0 + $0x18] sm:$0xff]  ;;  %v39_v4 = vld [vmem:[%s2178_s0 + $0x8] sm:$0xff]  ;;  %v110_v7 = vld [vmem:[#allocation2 + $0x70] sm:$0xff]  ;;  %vm1847_vm0 = vmmov 0   ;;  %v1848_v34 = vmov 1.0   ;;  %s1850_s29 = smov 32  }
  0x10   :  { %55 = vperm.xlu1 %1701, %v40_v1   ;;  %49 = vperm.xlu0 %1700, %v38_v2   ;;  %v111_v5 = vld [vmem:[#allocation2 + $0x78] sm:$0xff]  ;;  %v109_v8 = vld [vmem:[#allocation2 + $0x68] sm:$0xff]  ;;  %v42_v10 = vld [vmem:[%s2178_s0 + $0x20] sm:$0xff]  ;;  %v47_v31 = vand.u32 127, %v46_v30  ;;  %vm228_vm9 = vcmask 261120  }
  0x11   :  { %1591 = vmatprep.subr.mxu1 %v1846_v6  ;;  %1536 = vmatprep.subr.mxu0 %v111_v5  ;;  %v43_v9 = vld [vmem:[%s2178_s0 + $0x28] sm:$0xff]  ;;  %v108_v11 = vld [vmem:[#allocation2 + $0x60] sm:$0xff]  ;;  %v1917_v12 = vld [vmem:[%s2180_s2 + $0x18] sm:$0xff] }
  0x12   :  { %1537 = vmatpush3.msra.mxu0 %v111_v5  ;;  %v45_v13 = vld [vmem:[%s2178_s0 + $0x38] sm:$0xff]  ;;  %v44_v14 = vld [vmem:[%s2178_s0 + $0x30] sm:$0xff]  ;;  %1592 = vmatpush3.msra.mxu1 %v1917_v12  ;;  %v1936_v18 = vld [vmem:[%s2180_s2 + $0x8] sm:$0xff] }
  0x13   :  { %1538 = vmatprep.subr.mxu0 %v110_v7  ;;  %v107_v15 = vld [vmem:[#allocation2 + $0x58] sm:$0xff]  ;;  %v1929_v16 = vld [vmem:[%s2180_s2 + $0x10] sm:$0xff]  ;;  %1593 = vmatprep.subr.mxu1 %v1846_v6  ;;  %v105_v19 = vld [vmem:[#allocation2 + $0x48] sm:$0xff] }
  0x14   :  { %58 = vperm.xlu1 %1701, %v41_v3   ;;  %52 = vperm.xlu0 %1700, %v39_v4   ;;  %v106_v17 = vld [vmem:[#allocation2 + $0x50] sm:$0xff]  ;;  %v1943_v20 = vld [vmem:[%s2180_s2] sm:$0xff]  ;;  %v103_v22 = vld [vmem:[#allocation2 + $0x38] sm:$0xff] }
  0x15   :  { %1539 = vmatpush3.msra.mxu0 %v110_v7  ;;  %1594 = vmatpush3.msra.mxu1 %v1929_v16  ;;  %v104_v21 = vld [vmem:[#allocation2 + $0x40] sm:$0xff]  ;;  %v102_v23 = vld [vmem:[#allocation2 + $0x30] sm:$0xff]  ;;  %v101_v24 = vld [vmem:[#allocation2 + $0x28] sm:$0xff] }
  0x16   :  { %1540 = vmatprep.subr.mxu0 %v109_v8  ;;  %1595 = vmatprep.subr.mxu1 %v1846_v6  ;;  %v100_v25 = vld [vmem:[#allocation2 + $0x20] sm:$0xff]  ;;  %v99_v26 = vld [vmem:[#allocation2 + $0x18] sm:$0xff]  ;;  %v98_v27 = vld [vmem:[#allocation2 + $0x10] sm:$0xff] }
  0x17   :  { %1541 = vmatpush3.msra.mxu0 %v109_v8  ;;  %1596 = vmatpush3.msra.mxu1 %v1936_v18  ;;  %v97_v28 = vld [vmem:[#allocation2 + $0x8] sm:$0xff]  ;;  %v96_v29 = vld [vmem:[#allocation2] sm:$0xff] }
  0x18   :  { %64 = vperm.xlu1 %1701, %v43_v9   ;;  %61 = vperm.xlu0 %1700, %v42_v10   ;;  %v1427_v41 = vld [vmem:[%s2181_s3] ss:$0 sm:$0xff]  ;;  %s1849_s3 = smov 64  }
  0x19   :  { %1542 = vmatprep.subr.mxu0 %v108_v11  ;;  %1597 = vmatprep.subr.mxu1 %v1846_v6 }
  0x1a   :  { %1543 = vmatpush3.msra.mxu0 %v108_v11  ;;  %1598 = vmatpush3.msra.mxu1 %v1943_v20 }
  0x1b   :  { %1544 = vmatprep.subr.mxu0 %v107_v15  ;;  %1599 = vmatprep.mubr.msk.f32.mxu1 %vm1847_vm0, %v1846_v6 }
  0x1c   :  { %70 = vperm.xlu1 %1701, %v45_v13   ;;  %67 = vperm.xlu0 %1700, %v44_v14  }
  0x1d   :  { %1545 = vmatpush3.msra.mxu0 %v107_v15  ;;  %1602 = vmatprep.subr.mxu1 %v1846_v6 }
  0x1e   :  { %1546 = vmatprep.subr.mxu0 %v106_v17 }
  0x1f   :  { %1547 = vmatpush3.msra.mxu0 %v106_v17 }
  0x20   :  { %1548 = vmatprep.subr.mxu0 %v105_v19 }
  0x21   :  { %1549 = vmatpush3.msra.mxu0 %v105_v19 }
  0x22   :  { %1550 = vmatprep.subr.mxu0 %v104_v21 }
  0x23   :  { %1551 = vmatpush3.msra.mxu0 %v104_v21 }
  0x24   :  { %1552 = vmatprep.subr.mxu0 %v103_v22 }
  0x25   :  { %1553 = vmatpush3.msra.mxu0 %v103_v22 }
  0x26   :  { %1554 = vmatprep.subr.mxu0 %v102_v23 }
  0x27   :  { %1555 = vmatpush3.msra.mxu0 %v102_v23 }
  0x28   :  { %1556 = vmatprep.subr.mxu0 %v101_v24 }
  0x29   :  { %1557 = vmatpush3.msra.mxu0 %v101_v24 }
  0x2a   :  { %1558 = vmatprep.subr.mxu0 %v100_v25 }
  0x2b   :  { %1559 = vmatpush3.msra.mxu0 %v100_v25 }
  0x2c   :  { %1560 = vmatprep.subr.mxu0 %v99_v26 }
  0x2d   :  { %1561 = vmatpush3.msra.mxu0 %v99_v26 }
  0x2e   :  { %1562 = vmatprep.subr.mxu0 %v98_v27 }
  0x2f   :  { %1563 = vmatpush3.msra.mxu0 %v98_v27 }
  0x30   :  { %1564 = vmatprep.subr.mxu0 %v97_v28 }
  0x31   :  { %1565 = vmatpush3.msra.mxu0 %v97_v28 }
  0x32   :  { %1566 = vmatprep.subr.mxu0 %v96_v29 }
  0x33   :  { %1567 = vmatpush3.msra.mxu0 %v96_v29 }
  0x34   :  { %1580 = vmatprep.subr.mxu0 %v1846_v6 }
  0x8b   :  { %v56_v32 = vpop.permute.xlu1 %55  ;;  %v50_v33 = vpop.permute.xlu0 %49 }
  0x8c   :  { %vm72_vm1 = vcmp.eq.s32.totalorder %v47_v31, %v50_v33  ;;  %vm74_vm2 = vcmp.eq.s32.totalorder %v47_v31, %v56_v32 }
  0x8d   :  { %1568 = vmatprep.mubr.msk.f32.mxu0 %vm72_vm1, %v1848_v34 }
  0x8f   :  { %v59_v35 = vpop.permute.xlu1 %58  ;;  %v53_v36 = vpop.permute.xlu0 %52 }
  0x90   :  { %vm73_vm3 = vcmp.eq.s32.totalorder %v47_v31, %v53_v36  ;;  %vm75_vm4 = vcmp.eq.s32.totalorder %v47_v31, %v59_v35 }
  0x91   :  { %1569 = vmatmul.mubr.msk.f32.vlgmr.msra.gmra.mxu0 %vm73_vm3, %v1848_v34 }
  0x92   :  { %1581 = vmatpush3.msra.mxu0 %v1917_v12  ;;  %1571 = vmatprep.mubr.msk.f32.mxu0 %vm74_vm2, %v1848_v34 }
  0x93   :  { %v65_v37 = vpop.permute.xlu1 %64  ;;  %v62_v38 = vpop.permute.xlu0 %61  ;;  %1582 = vmatprep.subr.mxu0 %v1846_v6 }
  0x94   :  { %vm76_vm5 = vcmp.eq.s32.totalorder %v47_v31, %v62_v38  ;;  %1583 = vmatpush3.msra.mxu0 %v1929_v16  ;;  %vm77_vm6 = vcmp.eq.s32.totalorder %v47_v31, %v65_v37 }
  0x95   :  { %1572 = vmatmul.mubr.msk.f32.gmra.mxu0 %vm75_vm4, %v1848_v34  ;;  %1584 = vmatprep.subr.mxu0 %v1846_v6 }
  0x96   :  { %1574 = vmatprep.mubr.msk.f32.mxu0 %vm76_vm5, %v1848_v34  ;;  %1585 = vmatpush3.msra.mxu0 %v1936_v18 }
  0x97   :  { %v68_v39 = vpop.permute.xlu0 %67  ;;  %1586 = vmatprep.subr.mxu0 %v1846_v6  ;;  %v71_v40 = vpop.permute.xlu1 %70 }
  0x98   :  { %vm78_vm7 = vcmp.eq.s32.totalorder %v47_v31, %v68_v39  ;;  %1587 = vmatpush3.msra.mxu0 %v1943_v20  ;;  %vm79_vm8 = vcmp.eq.s32.totalorder %v47_v31, %v71_v40 }
  0x99   :  { %1575 = vmatmul.mubr.msk.f32.gmra.mxu0 %vm77_vm6, %v1848_v34  ;;  %1635 = vmatprep.subr.mxu0 %v1846_v6 }
  0x9a   :  { %1577 = vmatprep.mubr.msk.f32.mxu0 %vm78_vm7, %v1848_v34 }
  0x9d   :  { %1578 = vmatmul.mubr.msk.f32.gmra.mxu0 %vm79_vm8, %v1848_v34 }
  0x9e   :  { %1588 = vmatprep.mubr.msk.f32.mxu0 %vm1847_vm0, %v1846_v6 }
  0xa1   :  { %1589 = vmatmul.mubr.f32.vlgmr.msra.gmra.mxu0 %v1846_v6 }
  0xa2   :  { %1636 = vmatpush3.msra.mxu0 %v1917_v12  ;;  %1643 = vmatprep.mubr.msk.f32.mxu0 %vm1847_vm0, %v1846_v6 }
  0xa3   :  { %1637 = vmatprep.subr.mxu0 %v1846_v6 }
  0xa4   :  { %1638 = vmatpush3.msra.mxu0 %v1929_v16 }
  0xa5   :  { %1639 = vmatprep.subr.mxu0 %v1846_v6 }
  0xa6   :  { %1640 = vmatpush3.msra.mxu0 %v1936_v18 }
  0xa7   :  { %1641 = vmatprep.subr.mxu0 %v1846_v6 }
  0xa8   :  { %1642 = vmatpush3.msra.mxu0 %v1943_v20 }
  0xa9   :  { %1657 = vmatprep.subr.mxu0 %v1846_v6 }
 0x151   :  { %v1570_v42 = vpop.f32.mrf.mxu0 }
 0x152   :  { %v191_v43 = vadd.f32 %v1570_v42, %v1427_v41 }
 0x153   :  { %v185_v44 = vpop.f32.mrf.mxu0 }
 0x154   :  { %v186_v56 = vadd.f32 %v1427_v41, %v185_v44 }
 0x155   :  { %v1573_v45 = vpop.f32.mrf.mxu0 }
 0x156   :  { %v1976_v46 = vadd.f32 %v1573_v45, %v1427_v41 }
 0x157   :  { %v195_v47 = vpop.f32.mrf.mxu0 }
 0x158   :  { %v1978_v48 = vadd.f32 %v1427_v41, %v195_v47 }
 0x159   :  { %v1576_v49 = vpop.f32.mrf.mxu0 }
 0x15a   :  { %v1980_v50 = vadd.f32 %v1576_v49, %v1427_v41 }
 0x15b   :  { %v205_v51 = vpop.f32.mrf.mxu0 }
 0x15c   :  { %v1982_v52 = vadd.f32 %v1427_v41, %v205_v51 }
 0x15d   :  { %v1579_v53 = vpop.f32.mrf.mxu0 }
 0x15e   :  { %v1984_v54 = vadd.f32 %v1579_v53, %v1427_v41 }
 0x15f   :  { %v215_v55 = vpop.f32.mrf.mxu0 }
 0x160   :  { %v1986_v57 = vadd.f32 %v1427_v41, %v215_v55 }
 0x161   :  { %v298_v58 = vpop.f32.mrf.mxu0 }
 0x162   :  { %v302_v59 = vadd.f32 %v298_v58, %v186_v56 }
 0x163   :  { %v1590_v60 = vpop.f32.mrf.mxu0 }
 0x164   :  { %1702 = vtanh.f32 %v302_v59  ;;  %v1436_v62 = vmul.f32 -1.442695, %v302_v59 }
 0x166   :  { %1704 = vpow2.f32 %v1436_v62 }
 0x171   :  { %v1703_v61 = vpop.eup %1702 }
 0x172   :  { %312 = vrot.lane.b32.xlu0 %v1703_v61, %s1849_s3 }
 0x173   :  { %v1705_v63 = vpop.eup %1704 }
 0x174   :  { %v306_v0 = vadd.f32 1.0, %v1705_v63 }
 0x176   :  { %1706 = vrcp.f32 %v306_v0 }
 0x183   :  { %v1707_v1 = vpop.eup %1706 }
 0x184   :  { %v310_v4 = vmul.f32 0.0, %v1707_v1 }
 0x1e4   :  { %v313_v2 = vpop.permute.xlu0 %312 }
 0x1e5   :  { %v315_v3 = vmul.f32 %v1707_v1, %v313_v2 }
 0x1e7   :  { %317 = vrot.lane.b32.xlu1 %v315_v3, %s1850_s29 }
 0x259   :  { %v318_v5 = vpop.permute.xlu1 %317 }
 0x25a   :  { %v320_v7 = vadd.f32 %v318_v5, %v310_v4 }
 0x25c   :  { %1708 = vtanh.f32 %v320_v7 }
 0x269   :  { %v1709_v8 = vpop.eup %1708 }
 0x26a   :  { %323 = vrot.lane.b32.xlu0 %v1709_v8, %s1849_s3 }
 0x2dc   :  { %v324_v9 = vpop.permute.xlu0 %323 }
 0x2dd   :  { %v326_v10 = vmul.f32 %v1707_v1, %v324_v9 }
 0x2df   :  { %328 = vrot.lane.b32.xlu1 %v326_v10, %s1850_s29 }
 0x351   :  { %v1992_v11 = vpop.permute.xlu1 %328 }
 0x352   :  { %1600 = vmatmul.mubr.msk.f32.vlgmr.msra.gmra.mxu1 %vm228_vm9, %v1992_v11 }
 0x353   :  { %1603 = vmatpush3.msra.mxu1 %v1917_v12  ;;  %1610 = vmatprep.mubr.msk.f32.mxu1 %vm1847_vm0, %v1846_v6 }
 0x354   :  { %1604 = vmatprep.subr.mxu1 %v1846_v6 }
 0x355   :  { %1605 = vmatpush3.msra.mxu1 %v1929_v16 }
 0x356   :  { %1606 = vmatprep.subr.mxu1 %v1846_v6 }
 0x357   :  { %1607 = vmatpush3.msra.mxu1 %v1936_v18 }
 0x358   :  { %1608 = vmatprep.subr.mxu1 %v1846_v6 }
 0x359   :  { %1609 = vmatpush3.msra.mxu1 %v1943_v20 }
 0x35a   :  { %1613 = vmatprep.subr.mxu1 %v1846_v6 }
 0x412   :  { %v398_v13 = vpop.f32.mrf.mxu1 }
 0x413   :  { %v402_v14 = vadd.f32 %v398_v13, %v191_v43 }
 0x414   :  { %v1601_v15 = vpop.f32.mrf.mxu1 }
 0x415   :  { %1710 = vtanh.f32 %v402_v14  ;;  %v1438_v19 = vmul.f32 -1.442695, %v402_v14 }
 0x417   :  { %1712 = vpow2.f32 %v1438_v19 }
 0x422   :  { %v1711_v17 = vpop.eup %1710 }
 0x423   :  { %412 = vrot.lane.b32.xlu0 %v1711_v17, %s1849_s3 }
 0x424   :  { %v1713_v21 = vpop.eup %1712 }
 0x425   :  { %v406_v22 = vadd.f32 1.0, %v1713_v21 }
 0x427   :  { %1714 = vrcp.f32 %v406_v22 }
 0x434   :  { %v1715_v23 = vpop.eup %1714 }
 0x435   :  { %v410_v26 = vmul.f32 %v1715_v23, %v320_v7 }
 0x495   :  { %v413_v24 = vpop.permute.xlu0 %412 }
 0x496   :  { %v415_v25 = vmul.f32 %v1715_v23, %v413_v24 }
 0x498   :  { %417 = vrot.lane.b32.xlu1 %v415_v25, %s1850_s29 }
 0x50a   :  { %v418_v27 = vpop.permute.xlu1 %417 }
 0x50b   :  { %v420_v28 = vadd.f32 %v418_v27, %v410_v26 }
 0x50d   :  { %1716 = vtanh.f32 %v420_v28 }
 0x51a   :  { %v1717_v29 = vpop.eup %1716 }
 0x51b   :  { %423 = vrot.lane.b32.xlu0 %v1717_v29, %s1849_s3 }
 0x58d   :  { %v424_v31 = vpop.permute.xlu0 %423 }
 0x58e   :  { %v426_v32 = vmul.f32 %v1715_v23, %v424_v31 }
 0x590   :  { %428 = vrot.lane.b32.xlu1 %v426_v32, %s1850_s29 }
 0x602   :  { %v2010_v33 = vpop.permute.xlu1 %428 }
 0x603   :  { %1611 = vmatmul.mubr.msk.f32.vlgmr.msra.gmra.mxu1 %vm228_vm9, %v2010_v33 }
 0x604   :  { %1614 = vmatpush3.msra.mxu1 %v1917_v12  ;;  %1621 = vmatprep.mubr.msk.f32.mxu1 %vm1847_vm0, %v1846_v6 }
 0x605   :  { %1615 = vmatprep.subr.mxu1 %v1846_v6 }
 0x606   :  { %1616 = vmatpush3.msra.mxu1 %v1929_v16 }
 0x607   :  { %1617 = vmatprep.subr.mxu1 %v1846_v6 }
 0x608   :  { %1618 = vmatpush3.msra.mxu1 %v1936_v18 }
 0x609   :  { %1619 = vmatprep.subr.mxu1 %v1846_v6 }
 0x60a   :  { %1620 = vmatpush3.msra.mxu1 %v1943_v20 }
 0x60b   :  { %1624 = vmatprep.subr.mxu1 %v1846_v6 }
 0x6c3   :  { %v498_v34 = vpop.f32.mrf.mxu1 }
 0x6c4   :  { %v502_v35 = vadd.f32 %v498_v34, %v1978_v48 }
 0x6c5   :  { %v1612_v36 = vpop.f32.mrf.mxu1 }
 0x6c6   :  { %1718 = vtanh.f32 %v502_v35  ;;  %v1440_v38 = vmul.f32 -1.442695, %v502_v35 }
 0x6c8   :  { %1720 = vpow2.f32 %v1440_v38 }
 0x6d3   :  { %v1719_v37 = vpop.eup %1718 }
 0x6d4   :  { %512 = vrot.lane.b32.xlu0 %v1719_v37, %s1849_s3 }
 0x6d5   :  { %v1721_v39 = vpop.eup %1720 }
 0x6d6   :  { %v506_v40 = vadd.f32 1.0, %v1721_v39 }
 0x6d8   :  { %1722 = vrcp.f32 %v506_v40 }
 0x6e5   :  { %v1723_v41 = vpop.eup %1722 }
 0x6e6   :  { %v510_v44 = vmul.f32 %v1723_v41, %v420_v28 }
 0x746   :  { %v513_v42 = vpop.permute.xlu0 %512 }
 0x747   :  { %v515_v43 = vmul.f32 %v1723_v41, %v513_v42 }
 0x749   :  { %517 = vrot.lane.b32.xlu1 %v515_v43, %s1850_s29 }
 0x7bb   :  { %v518_v45 = vpop.permute.xlu1 %517 }
 0x7bc   :  { %v520_v47 = vadd.f32 %v518_v45, %v510_v44 }
 0x7be   :  { %1724 = vtanh.f32 %v520_v47 }
 0x7cb   :  { %v1725_v48 = vpop.eup %1724 }
 0x7cc   :  { %523 = vrot.lane.b32.xlu0 %v1725_v48, %s1849_s3 }
 0x83e   :  { %v524_v49 = vpop.permute.xlu0 %523 }
 0x83f   :  { %v526_v51 = vmul.f32 %v1723_v41, %v524_v49 }
 0x841   :  { %528 = vrot.lane.b32.xlu1 %v526_v51, %s1850_s29 }
 0x8b3   :  { %v2029_v53 = vpop.permute.xlu1 %528 }
 0x8b4   :  { %1622 = vmatmul.mubr.msk.f32.vlgmr.msra.gmra.mxu1 %vm228_vm9, %v2029_v53 }
 0x8b5   :  { %1625 = vmatpush3.msra.mxu1 %v1917_v12  ;;  %1632 = vmatprep.mubr.msk.f32.mxu1 %vm1847_vm0, %v1846_v6 }
 0x8b6   :  { %1626 = vmatprep.subr.mxu1 %v1846_v6 }
 0x8b7   :  { %1627 = vmatpush3.msra.mxu1 %v1929_v16 }
 0x8b8   :  { %1628 = vmatprep.subr.mxu1 %v1846_v6 }
 0x8b9   :  { %1629 = vmatpush3.msra.mxu1 %v1936_v18 }
 0x8ba   :  { %1630 = vmatprep.subr.mxu1 %v1846_v6 }
 0x8bb   :  { %1631 = vmatpush3.msra.mxu1 %v1943_v20 }
 0x8bc   :  { %1646 = vmatprep.subr.mxu1 %v1846_v6 }
 0x974   :  { %v598_v55 = vpop.f32.mrf.mxu1 }
 0x975   :  { %v602_v56 = vadd.f32 %v598_v55, %v1976_v46 }
 0x976   :  { %v1623_v58 = vpop.f32.mrf.mxu1 }
 0x977   :  { %1726 = vtanh.f32 %v602_v56  ;;  %v1442_v60 = vmul.f32 -1.442695, %v602_v56 }
 0x979   :  { %1728 = vpow2.f32 %v1442_v60 }
 0x984   :  { %v1727_v59 = vpop.eup %1726 }
 0x985   :  { %612 = vrot.lane.b32.xlu0 %v1727_v59, %s1849_s3 }
 0x986   :  { %v1729_v61 = vpop.eup %1728 }
 0x987   :  { %v606_v62 = vadd.f32 1.0, %v1729_v61 }
 0x989   :  { %1730 = vrcp.f32 %v606_v62 }
 0x996   :  { %v1731_v63 = vpop.eup %1730 }
 0x997   :  { %v610_v2 = vmul.f32 %v1731_v63, %v520_v47 }
 0x9f7   :  { %v613_v0 = vpop.permute.xlu0 %612 }
 0x9f8   :  { %v615_v1 = vmul.f32 %v1731_v63, %v613_v0 }
 0x9fa   :  { %617 = vrot.lane.b32.xlu1 %v615_v1, %s1850_s29 }
 0xa6c   :  { %v618_v3 = vpop.permute.xlu1 %617 }
 0xa6d   :  { %v620_v4 = vadd.f32 %v618_v3, %v610_v2 }
 0xa6f   :  { %1732 = vtanh.f32 %v620_v4 }
 0xa7c   :  { %v1733_v46 = vpop.eup %1732 }
 0xa7d   :  { %623 = vrot.lane.b32.xlu0 %v1733_v46, %s1849_s3 }
 0xaef   :  { %v624_v5 = vpop.permute.xlu0 %623 }
 0xaf0   :  { %v626_v7 = vmul.f32 %v1731_v63, %v624_v5 }
 0xaf2   :  { %628 = vrot.lane.b32.xlu1 %v626_v7, %s1850_s29 }
 0xb64   :  { %v2048_v8 = vpop.permute.xlu1 %628 }
 0xb65   :  { %1633 = vmatmul.mubr.msk.f32.vlgmr.msra.gmra.mxu1 %vm228_vm9, %v2048_v8 }
 0xb66   :  { %1647 = vmatpush3.msra.mxu1 %v1917_v12  ;;  %1654 = vmatprep.mubr.msk.f32.mxu1 %vm1847_vm0, %v1846_v6 }
 0xb67   :  { %1648 = vmatprep.subr.mxu1 %v1846_v6 }
 0xb68   :  { %1649 = vmatpush3.msra.mxu1 %v1929_v16 }
 0xb69   :  { %1650 = vmatprep.subr.mxu1 %v1846_v6 }
 0xb6a   :  { %1651 = vmatpush3.msra.mxu1 %v1936_v18 }
 0xb6b   :  { %1652 = vmatprep.subr.mxu1 %v1846_v6 }
 0xb6c   :  { %1653 = vmatpush3.msra.mxu1 %v1943_v20 }
 0xc25   :  { %v698_v9 = vpop.f32.mrf.mxu1 }
 0xc26   :  { %v702_v10 = vadd.f32 %v698_v9, %v1982_v52 }
 0xc27   :  { %v1634_v13 = vpop.f32.mrf.mxu1 }
 0xc28   :  { %1734 = vtanh.f32 %v702_v10  ;;  %v1444_v15 = vmul.f32 -1.442695, %v702_v10 }
 0xc2a   :  { %1736 = vpow2.f32 %v1444_v15 }
 0xc35   :  { %v1735_v14 = vpop.eup %1734 }
 0xc36   :  { %712 = vrot.lane.b32.xlu0 %v1735_v14, %s1849_s3 }
 0xc37   :  { %v1737_v17 = vpop.eup %1736 }
 0xc38   :  { %v706_v19 = vadd.f32 1.0, %v1737_v17 }
 0xc3a   :  { %1738 = vrcp.f32 %v706_v19  ;;  %v1177_v19 = vld [vmem:[%s2182_s4 + $0x18] sm:$0xff] }
 0xc3b   :  { %1668 = vmatprep.subr.mxu1 %v1177_v19 }
 0xc47   :  { %v1739_v21 = vpop.eup %1738 }
 0xc48   :  { %v710_v24 = vmul.f32 %v1739_v21, %v620_v4 }
 0xca8   :  { %v713_v22 = vpop.permute.xlu0 %712 }
 0xca9   :  { %v715_v23 = vmul.f32 %v1739_v21, %v713_v22  ;;  %v1175_v22 = vld [vmem:[%s2182_s4 + $0x8] sm:$0xff] }
 0xcab   :  { %717 = vrot.lane.b32.xlu1 %v715_v23, %s1850_s29  ;;  %v1174_v23 = vld [vmem:[%s2182_s4] sm:$0xff] }
 0xd1d   :  { %v718_v25 = vpop.permute.xlu1 %717 }
 0xd1e   :  { %v720_v26 = vadd.f32 %v718_v25, %v710_v24 }
 0xd20   :  { %1740 = vtanh.f32 %v720_v26 }
 0xd2d   :  { %v1741_v52 = vpop.eup %1740 }
 0xd2e   :  { %723 = vrot.lane.b32.xlu0 %v1741_v52, %s1849_s3 }
 0xda0   :  { %v724_v27 = vpop.permute.xlu0 %723 }
 0xda1   :  { %v726_v28 = vmul.f32 %v1739_v21, %v724_v27  ;;  %v1176_v21 = vld [vmem:[%s2182_s4 + $0x10] sm:$0xff]  ;;  %v1044_v27 = vshrl.u32 %v46_v30, 7 }
 0xda3   :  { %728 = vrot.lane.b32.xlu1 %v726_v28, %s1850_s29 }
 0xe15   :  { %v2066_v29 = vpop.permute.xlu1 %728 }
 0xe16   :  { %1644 = vmatmul.mubr.msk.f32.vlgmr.msra.gmra.mxu0 %vm228_vm9, %v2066_v29 }
 0xe17   :  { %1658 = vmatpush3.msra.mxu0 %v1917_v12  ;;  %1665 = vmatprep.mubr.msk.f32.mxu0 %vm1847_vm0, %v1846_v6 }
 0xe18   :  { %1659 = vmatprep.subr.mxu0 %v1846_v6 }
 0xe19   :  { %1660 = vmatpush3.msra.mxu0 %v1929_v16 }
 0xe1a   :  { %1661 = vmatprep.subr.mxu0 %v1846_v6 }
 0xe1b   :  { %1662 = vmatpush3.msra.mxu0 %v1936_v18 }
 0xe1c   :  { %1663 = vmatprep.subr.mxu0 %v1846_v6 }
 0xe1d   :  { %1664 = vmatpush3.msra.mxu0 %v1943_v20 }
 0xed6   :  { %v798_v31 = vpop.f32.mrf.mxu0 }
 0xed7   :  { %v802_v32 = vadd.f32 %v798_v31, %v1980_v50  ;;  %v1852_v31 = vmov 1934713408  }
 0xed8   :  { %v1645_v34 = vpop.f32.mrf.mxu0 }
 0xed9   :  { %1742 = vtanh.f32 %v802_v32  ;;  %v1446_v35 = vmul.f32 -1.442695, %v802_v32  ;;  %v1105_v32 = vunpack.c.l.s4 %v1852_v31  ;;  %v1054_v34 = vcombine.low %v2010_v33, %v2048_v8 }
 0xedb   :  { %1744 = vpow2.f32 %v1446_v35  ;;  %v1038_v35 = vcombine.low %v1992_v11, %v2029_v53 }
 0xee6   :  { %v1743_v12 = vpop.eup %1742 }
 0xee7   :  { %812 = vrot.lane.b32.xlu0 %v1743_v12, %s1849_s3 }
 0xee8   :  { %v1745_v36 = vpop.eup %1744 }
 0xee9   :  { %v806_v16 = vadd.f32 1.0, %v1745_v36  ;;  %v1106_v36 = vunpack.c.0.s8 %v1105_v32 }
 0xeeb   :  { %1746 = vrcp.f32 %v806_v16 }
 0xef8   :  { %v1747_v37 = vpop.eup %1746 }
 0xef9   :  { %v810_v6 = vmul.f32 %v1747_v37, %v720_v26  ;;  %v1851_v26 = vmov 1983009808  }
 0xefa   :  { %v1041_v52 = vunpack.c.l.s4 %v1851_v26 }
 0xefc   :  { %v1042_v28 = vunpack.c.0.s8 %v1041_v52 }
 0xefe   :  { %v1045_v12 = vsub.s32 %v1042_v28, %v1044_v27 }
 0xf00   :  { %v1062_v16 = vrot.slane %v1054_v34, %v1045_v12  ;;  %v1046_v30 = vrot.slane %v1038_v35, %v1045_v12 }
 0xf59   :  { %v813_v38 = vpop.permute.xlu0 %812 }
 0xf5a   :  { %v815_v18 = vmul.f32 %v1747_v37, %v813_v38  ;;  %v1055_v38 = vcombine.high %v2010_v33, %v2048_v8 }
 0xf5c   :  { %817 = vrot.lane.b32.xlu1 %v815_v18, %s1850_s29 }
 0xfce   :  { %v818_v20 = vpop.permute.xlu1 %817 }
 0xfcf   :  { %v820_v39 = vadd.f32 %v818_v20, %v810_v6 }
 0xfd1   :  { %1748 = vtanh.f32 %v820_v39 }
 0xfde   :  { %v1749_v50 = vpop.eup %1748 }
 0xfdf   :  { %823 = vrot.lane.b32.xlu0 %v1749_v50, %s1849_s3  ;;  %v1109_v50 = vsub.s32 %v1106_v36, %v1044_v27 }
0x1051   :  { %v824_v40 = vpop.permute.xlu0 %823 }
0x1052   :  { %v826_v41 = vmul.f32 %v1747_v37, %v824_v40  ;;  %v1039_v40 = vcombine.high %v1992_v11, %v2029_v53 }
0x1054   :  { %828 = vrot.lane.b32.xlu1 %v826_v41, %s1850_s29  ;;  %v1102_v41 = vcombine.low %v1046_v30, %v1062_v16 }
0x10c6   :  { %v2084_v42 = vpop.permute.xlu1 %828 }
0x10c7   :  { %1655 = vmatmul.mubr.msk.f32.vlgmr.msra.gmra.mxu1 %vm228_vm9, %v2084_v42 }
0x10c8   :  { %1669 = vmatpush3.msra.mxu1 %v1177_v19 }
0x10c9   :  { %1670 = vmatprep.subr.mxu1 %v1176_v21 }
0x10ca   :  { %1671 = vmatpush3.msra.mxu1 %v1176_v21 }
0x10cb   :  { %1672 = vmatprep.subr.mxu1 %v1175_v22 }
0x10cc   :  { %1673 = vmatpush3.msra.mxu1 %v1175_v22 }
0x10cd   :  { %1674 = vmatprep.subr.mxu1 %v1174_v23 }
0x10ce   :  { %1675 = vmatpush3.msra.mxu1 %v1174_v23 }
0x1187   :  { %v898_v43 = vpop.f32.mrf.mxu1 }
0x1188   :  { %v902_v44 = vadd.f32 %v898_v43, %v1986_v57 }
0x1189   :  { %v1656_v45 = vpop.f32.mrf.mxu1 }
0x118a   :  { %1750 = vtanh.f32 %v902_v44  ;;  %v1448_v48 = vmul.f32 -1.442695, %v902_v44 }
0x118c   :  { %1752 = vpow2.f32 %v1448_v48  ;;  %v1103_v48 = vcombine.high %v1046_v30, %v1062_v16 }
0x1197   :  { %v1751_v47 = vpop.eup %1750 }
0x1198   :  { %912 = vrot.lane.b32.xlu0 %v1751_v47, %s1849_s3  ;;  %v1069_v47 = vrot.slane %v1055_v38, %v1045_v12 }
0x1199   :  { %v1753_v49 = vpop.eup %1752 }
0x119a   :  { %v906_v51 = vadd.f32 1.0, %v1753_v49 }
0x119c   :  { %1754 = vrcp.f32 %v906_v51  ;;  %v1053_v51 = vrot.slane %v1039_v40, %v1045_v12 }
0x11a9   :  { %v1755_v55 = vpop.eup %1754 }
0x11aa   :  { %v910_v59 = vmul.f32 %v1755_v55, %v820_v39 }
0x120a   :  { %v913_v56 = vpop.permute.xlu0 %912 }
0x120b   :  { %v915_v58 = vmul.f32 %v1755_v55, %v913_v56 }
0x120d   :  { %917 = vrot.lane.b32.xlu1 %v915_v58, %s1850_s29  ;;  %v1110_v58 = vrot.slane %v1102_v41, %v1109_v50 }
0x127f   :  { %v918_v60 = vpop.permute.xlu1 %917 }
0x1280   :  { %v920_v61 = vadd.f32 %v918_v60, %v910_v59  ;;  %v1118_v59 = vcombine.low %v1053_v51, %v1069_v47 }
0x1282   :  { %1756 = vtanh.f32 %v920_v61 }
0x128f   :  { %v1757_v57 = vpop.eup %1756 }
0x1290   :  { %923 = vrot.lane.b32.xlu0 %v1757_v57, %s1849_s3 }
0x1302   :  { %v924_v62 = vpop.permute.xlu0 %923 }
0x1303   :  { %v926_v63 = vmul.f32 %v1755_v55, %v924_v62  ;;  %v1119_v62 = vcombine.high %v1053_v51, %v1069_v47 }
0x1305   :  { %928 = vrot.lane.b32.xlu1 %v926_v63, %s1850_s29  ;;  %v1126_v63 = vrot.slane %v1118_v59, %v1109_v50 }
0x1377   :  { %v2093_v0 = vpop.permute.xlu1 %928 }
0x1378   :  { %1666 = vmatmul.mubr.msk.f32.vlgmr.msra.gmra.mxu0 %vm228_vm9, %v2093_v0  ;;  %v1070_v37 = vcombine.low %v2066_v29, %v2093_v0  ;;  %v1071_v6 = vcombine.high %v2066_v29, %v2093_v0 }
0x137a   :  { %v1078_v43 = vrot.slane %v1070_v37, %v1045_v12  ;;  %v1085_v33 = vrot.slane %v1071_v6, %v1045_v12 }
0x1438   :  { %v998_v1 = vpop.f32.mrf.mxu0 }
0x1439   :  { %v1002_v2 = vadd.f32 %v998_v1, %v1984_v54 }
0x143a   :  { %v1667_v3 = vpop.f32.mrf.mxu0 }
0x143b   :  { %1758 = vtanh.f32 %v1002_v2  ;;  %v1450_v46 = vmul.f32 -1.442695, %v1002_v2  ;;  %v1133_v3 = vrot.slane %v1119_v62, %v1109_v50 }
0x143d   :  { %1760 = vpow2.f32 %v1450_v46 }
0x1448   :  { %v1759_v4 = vpop.eup %1758 }
0x1449   :  { %1012 = vrot.lane.b32.xlu0 %v1759_v4, %s1849_s3 }
0x144a   :  { %v1761_v5 = vpop.eup %1760 }
0x144b   :  { %v1006_v7 = vadd.f32 1.0, %v1761_v5 }
0x144d   :  { %1762 = vrcp.f32 %v1006_v7  ;;  %v1451_v7 = vld [vmem:[%s2183_s5] ss:$0 sm:$0xff]  ;;  %s1853_s5 = smov [#allocation5]  }
0x144e   :  { %s1407_s14 = sshll.u32 %s1853_s5, 4  ;;  %s1408_s14 = int_to_ptr.vmem [resolvable:$true] %s1407_s14 }
0x144f   :  { %s1818_s15 = scalar_lea.vmem %s1408_s14, 1024  ;;  %p1823_p6 = scmp.lt.s32.totalorder %s1408_s14, %s1408_s14 }
0x1450   :  { %p1819_p5 = scmp.ne.s32.totalorder %s1408_s14, %s1818_s15  ;;  %p1824_p7 = scmp.lt.s32.totalorder %s1818_s15, %s1818_s15 }
0x1452   :  { %p1825_p8 = por %p1824_p7, %p1823_p6 }
0x1454   :  { %p1826_p9 = pnand %p1825_p8, %p1819_p5 }
0x145a   :  { %v1763_v9 = vpop.eup %1762 }
0x145b   :  { %v1010_v14 = vmul.f32 %v1763_v9, %v920_v61  ;;  %v1117_v61 = vrot.slane %v1103_v48, %v1109_v50 }
0x14bb   :  { %v1013_v10 = vpop.permute.xlu0 %1012 }
0x14bc   :  { %v1015_v13 = vmul.f32 %v1763_v9, %v1013_v10 }
0x14be   :  { %1017 = vrot.lane.b32.xlu1 %v1015_v13, %s1850_s29 }
0x1530   :  { %v1018_v15 = vpop.permute.xlu1 %1017 }
0x1531   :  { %v1020_v17 = vadd.f32 %v1018_v15, %v1010_v14 }
0x1533   :  { %1764 = vtanh.f32 %v1020_v17 }
0x1540   :  { %v1765_v54 = vpop.eup %1764 }
0x1541   :  { %1023 = vrot.lane.b32.xlu0 %v1765_v54, %s1849_s3 }
0x15b3   :  { %v1024_v24 = vpop.permute.xlu0 %1023 }
0x15b4   :  { %v1026_v25 = vmul.f32 %v1763_v9, %v1024_v24 }
0x15b6   :  { %1028 = vrot.lane.b32.xlu1 %v1026_v25, %s1850_s29 }
0x1628   :  { %v1029_v18 = vpop.permute.xlu1 %1028 }
0x1629   :  { %v1086_v20 = vcombine.low %v2084_v42, %v1029_v18  ;;  %v1087_v39 = vcombine.high %v2084_v42, %v1029_v18 }
0x162b   :  { %v1094_v44 = vrot.slane %v1086_v20, %v1045_v12  ;;  %v1101_v45 = vrot.slane %v1087_v39, %v1045_v12 }
0x162d   :  { %v1134_v8 = vcombine.low %v1078_v43, %v1094_v44  ;;  %v1135_v49 = vcombine.high %v1078_v43, %v1094_v44  ;;  %v1150_v56 = vcombine.low %v1085_v33, %v1101_v45  ;;  %v1151_v57 = vcombine.high %v1085_v33, %v1101_v45 }
0x162f   :  { %v1142_v55 = vrot.slane %v1134_v8, %v1109_v50  ;;  %v1149_v29 = vrot.slane %v1135_v49, %v1109_v50  ;;  %v1158_v11 = vrot.slane %v1150_v56, %v1109_v50  ;;  %v1165_v1 = vrot.slane %v1151_v57, %v1109_v50 }
0x1631   :  { %v1166_v42 = vcombine.low %v1110_v58, %v1142_v55  ;;  %v1167_v60 = vcombine.high %v1110_v58, %v1142_v55  ;;  %v1168_v53 = vcombine.low %v1117_v61, %v1149_v29  ;;  %v1169_v0 = vcombine.high %v1117_v61, %v1149_v29 }
0x1632   :  { %v1170_v2 = vcombine.low %v1126_v63, %v1158_v11  ;;  %v1171_v4 = vcombine.high %v1126_v63, %v1158_v11  ;;  %v1172_v46 = vcombine.low %v1133_v3, %v1165_v1  ;;  %v1173_v5 = vcombine.high %v1133_v3, %v1165_v1 }
0x1633   :  { %1676 = vmatprep.mubr.msk.f32.mxu1 %vm228_vm9, %v1166_v42 }
0x1634   :  { %1677 = vmatmul.mubr.msk.f32.vlgmr.msra.gmra.mxu1 %vm228_vm9, %v1167_v60 }
0x1635   :  { %1679 = vmatprep.mubr.msk.f32.mxu1 %vm228_vm9, %v1168_v53 }
0x1638   :  { %1680 = vmatmul.mubr.msk.f32.gmra.mxu1 %vm228_vm9, %v1169_v0 }
0x1639   :  { %1682 = vmatprep.mubr.msk.f32.mxu1 %vm228_vm9, %v1170_v2 }
0x163c   :  { %1683 = vmatmul.mubr.msk.f32.gmra.mxu1 %vm228_vm9, %v1171_v4 }
0x163d   :  { %1685 = vmatprep.mubr.msk.f32.mxu1 %vm228_vm9, %v1172_v46 }
0x1640   :  { %1686 = vmatmul.mubr.msk.f32.gmra.mxu1 %vm228_vm9, %v1173_v5 }
0x16f4   :  { %v1678_v9 = vpop.f32.mrf.mxu1 }
0x16f5   :  { %v1281_v10 = vadd.f32 %v1678_v9, %v1451_v7 }
0x16f6   :  { %v1275_v13 = vpop.f32.mrf.mxu1 }
0x16f7   :  { %v1276_v14 = vadd.f32 %v1451_v7, %v1275_v13  ;;  %1316 = vmax.xlane.f32.xlu1 %v1281_v10 }
0x16f8   :  { %v1681_v15 = vpop.f32.mrf.mxu1 }
0x16f9   :  { %1314 = vmax.xlane.f32.xlu0 %v1276_v14  ;;  %v1291_v54 = vadd.f32 %v1681_v15, %v1451_v7 }
0x16fa   :  { %v1285_v17 = vpop.f32.mrf.mxu1 }
0x16fb   :  { %v1286_v22 = vadd.f32 %v1451_v7, %v1285_v17 }
0x16fc   :  { %v1684_v19 = vpop.f32.mrf.mxu1 }
0x16fd   :  { %1320 = vmax.xlane.f32.xlu0 %v1291_v54  ;;  %v1301_v26 = vadd.f32 %v1684_v19, %v1451_v7 }
0x16fe   :  { %v1295_v21 = vpop.f32.mrf.mxu1 }
0x16ff   :  { %v1296_v23 = vadd.f32 %v1451_v7, %v1295_v21 }
0x1700   :  { %v1687_v24 = vpop.f32.mrf.mxu1 }
0x1701   :  { %1322 = vmax.xlane.f32.xlu1 %v1296_v23  ;;  %1318 = vmax.xlane.f32.xlu0 %v1286_v22  ;;  %v1311_v27 = vadd.f32 %v1687_v24, %v1451_v7 }
0x1702   :  { %v1305_v25 = vpop.f32.mrf.mxu1 }
0x1703   :  { %v1306_v52 = vadd.f32 %v1451_v7, %v1305_v25 }
0x1705   :  { %1326 = vmax.xlane.f32.xlu1 %v1306_v52  ;;  %1324 = vmax.xlane.f32.xlu0 %v1301_v26 }
0x1709   :  { %1328 = vmax.xlane.f32.xlu0 %v1311_v27 }
0x1780   :  { %v1317_v28 = vpop.xlane.xlu1 %1316 }
0x1781   :  { %v2140_v31 = vsub.f32 %v1281_v10, %v1317_v28 }
0x1782   :  { %v1315_v32 = vpop.xlane.xlu0 %1314 }
0x1783   :  { %v1340_v34 = vmul.f32 1.442695, %v2140_v31  ;;  %v2143_v12 = vsub.f32 %v1276_v14, %v1315_v32 }
0x1785   :  { %1766 = vpow2.f32 %v1340_v34  ;;  %v1338_v35 = vmul.f32 1.442695, %v2143_v12 }
0x1786   :  { %v1321_v36 = vpop.xlane.xlu0 %1320 }
0x1787   :  { %1768 = vpow2.f32 %v1338_v35  ;;  %v2146_v16 = vsub.f32 %v1291_v54, %v1321_v36 }
0x1789   :  { %v1344_v37 = vmul.f32 1.442695, %v2146_v16 }
0x178a   :  { %v1323_v38 = vpop.xlane.xlu1 %1322  ;;  %v1319_v18 = vpop.xlane.xlu0 %1318 }
0x178b   :  { %1770 = vpow2.f32 %v1344_v37  ;;  %v2149_v30 = vsub.f32 %v1296_v23, %v1323_v38  ;;  %v2151_v6 = vsub.f32 %v1286_v22, %v1319_v18 }
0x178d   :  { %v1342_v20 = vmul.f32 1.442695, %v2151_v6  ;;  %v1346_v40 = vmul.f32 1.442695, %v2149_v30 }
0x178e   :  { %v1327_v39 = vpop.xlane.xlu1 %1326  ;;  %v1325_v50 = vpop.xlane.xlu0 %1324 }
0x178f   :  { %v2155_v41 = vsub.f32 %v1301_v26, %v1325_v50  ;;  %1772 = vpow2.f32 %v1342_v20  ;;  %v2157_v43 = vsub.f32 %v1306_v52, %v1327_v39 }
0x1790   :  { %1774 = vpow2.f32 %v1346_v40 }
0x1791   :  { %v1348_v44 = vmul.f32 1.442695, %v2155_v41  ;;  %v1350_v8 = vmul.f32 1.442695, %v2157_v43 }
0x1792   :  { %v1767_v45 = vpop.eup %1766  ;;  %v1329_v47 = vpop.xlane.xlu0 %1328 }
0x1793   :  { %v2160_v48 = vsub.f32 %v1311_v27, %v1329_v47  ;;  %1356 = vadd.xlane.f32.xlu0 %v1767_v45  ;;  %1776 = vpow2.f32 %v1348_v44 }
0x1794   :  { %v1769_v33 = vpop.eup %1768 }
0x1795   :  { %v1352_v49 = vmul.f32 1.442695, %v2160_v48  ;;  %1354 = vadd.xlane.f32.xlu1 %v1769_v33 }
0x1797   :  { %1778 = vpow2.f32 %v1352_v49 }
0x1798   :  { %v1771_v51 = vpop.eup %1770  ;;  %1780 = vpow2.f32 %v1350_v8 }
0x1799   :  { %1360 = vadd.xlane.f32.xlu0 %v1771_v51 }
0x179c   :  { %v1773_v55 = vpop.eup %1772 }
0x179d   :  { %1358 = vadd.xlane.f32.xlu1 %v1773_v55  ;;  %v1775_v29 = vpop.eup %1774 }
0x17a0   :  { %v1777_v56 = vpop.eup %1776 }
0x17a1   :  { %1362 = vadd.xlane.f32.xlu1 %v1775_v29  ;;  %1364 = vadd.xlane.f32.xlu0 %v1777_v56 }
0x17a4   :  { %v1779_v58 = vpop.eup %1778 }
0x17a5   :  { %v1781_v59 = vpop.eup %1780  ;;  %1368 = vadd.xlane.f32.xlu0 %v1779_v58 }
0x17a6   :  { %1366 = vadd.xlane.f32.xlu1 %v1781_v59 }
0x181c   :  { %v1357_v42 = vpop.xlane.xlu0 %1356 }
0x181d   :  { %1782 = vlog2.f32 %v1357_v42 }
0x181e   :  { %v1355_v60 = vpop.xlane.xlu1 %1354 }
0x181f   :  { %1784 = vlog2.f32 %v1355_v60 }
0x1822   :  { %v1361_v61 = vpop.xlane.xlu0 %1360 }
0x1823   :  { %1786 = vlog2.f32 %v1361_v61 }
0x1826   :  { %v1359_v57 = vpop.xlane.xlu1 %1358 }
0x1827   :  { %1788 = vlog2.f32 %v1359_v57 }
0x182a   :  { %v1783_v11 = vpop.eup %1782  ;;  %v1363_v62 = vpop.xlane.xlu1 %1362 }
0x182b   :  { %v1373_v53 = vmul.f32 0.6931472, %v1783_v11  ;;  %v1365_v63 = vpop.xlane.xlu0 %1364  ;;  %1790 = vlog2.f32 %v1363_v62 }
0x182c   :  { %v1785_v0 = vpop.eup %1784  ;;  %1792 = vlog2.f32 %v1365_v63 }
0x182d   :  { %v1387_v1 = vsub.f32 %v2140_v31, %v1373_v53  ;;  %v1371_v2 = vmul.f32 0.6931472, %v1785_v0 }
0x182f   :  { %1395 = vst [vmem:[#allocation5 + $0x8] sm:$0xff] %v1387_v1  ;;  %v1386_v3 = vsub.f32 %v2143_v12, %v1371_v2  ;;  %v1367_v4 = vpop.xlane.xlu1 %1366  ;;  %v1369_v46 = vpop.xlane.xlu0 %1368 }
0x1830   :  { %v1787_v5 = vpop.eup %1786  ;;  %1794 = vlog2.f32 %v1367_v4 }
0x1831   :  { %1394 = vst [vmem:[#allocation5] sm:$0xff] %v1386_v3  ;;  %v1377_v7 = vmul.f32 0.6931472, %v1787_v5  ;;  %1796 = vlog2.f32 %v1369_v46 }
0x1833   :  { %v1389_v9 = vsub.f32 %v2146_v16, %v1377_v7 }
0x1834   :  { %v1789_v10 = vpop.eup %1788 }
0x1835   :  { %1397 = vst [vmem:[#allocation5 + $0x18] sm:$0xff] %v1389_v9  ;;  %v1375_v13 = vmul.f32 0.6931472, %v1789_v10 }
0x1837   :  { %v1388_v14 = vsub.f32 %v2151_v6, %v1375_v13 }
0x1838   :  { %v1791_v15 = vpop.eup %1790 }
0x1839   :  { %v1793_v17 = vpop.eup %1792  ;;  %1396 = vst [vmem:[#allocation5 + $0x10] sm:$0xff] %v1388_v14  ;;  %v1379_v54 = vmul.f32 0.6931472, %v1791_v15 }
0x183a   :  { %v1381_v19 = vmul.f32 0.6931472, %v1793_v17 }
0x183b   :  { %v1390_v21 = vsub.f32 %v2149_v30, %v1379_v54 }
0x183c   :  { %v1391_v23 = vsub.f32 %v2155_v41, %v1381_v19 }
0x183d   :  { %v1795_v22 = vpop.eup %1794  ;;  %1398 = vst [vmem:[#allocation5 + $0x20] sm:$0xff] %v1390_v21 }
0x183e   :  { %v1797_v24 = vpop.eup %1796  ;;  %v1383_v25 = vmul.f32 0.6931472, %v1795_v22  ;;  %1399 = vst [vmem:[#allocation5 + $0x28] sm:$0xff] %v1391_v23 }
0x183f   :  { %v1385_v26 = vmul.f32 0.6931472, %v1797_v24 }
0x1840   :  { %v1392_v52 = vsub.f32 %v2157_v43, %v1383_v25 }
0x1841   :  { %v1393_v27 = vsub.f32 %v2160_v48, %v1385_v26 }
0x1842   :  { %1400 = vst [vmem:[#allocation5 + $0x30] sm:$0xff] %v1392_v52 }
0x1843   :  { %1401 = vst [vmem:[#allocation5 + $0x38] sm:$0xff] %v1393_v27 }
0x1844   :  { %1829 = shalt.err (!%p1826_p9)
}
0x1845   :  { %1413 = dma.vmem_to_hbm [thread:$0]  %s1408_s14, 1024, %s2184_s6, [#allocation4], %s1843_s24, %s1843_s24, %s1844_s25  }
0x1846   :  { %1840 = dma.done.wait [#allocation4], 1024  }
0x1847   :  { %1841 = vsyncadd [#allocation4], 4294966272 }
0x1848   :  { %1417 = vsyncpa [#allocation3], 1 }
0x1849   :  { %1418 = vsyncpa [#allocation4], 1 }

</bundles_post_ra>
